<compile_context>
chip_gen: v5e
topology: v5e:2x2
jax: 0.10.0
libtpu: 0.0.40
codegen_flags: <defaults>
</compile_context>

<pallas_src>
import jax
import jax.numpy as jnp
from jax import lax
from jax.experimental import pallas as pl
from jax.experimental.pallas import tpu as pltpu


def _round_up(x, m):
    return ((x + m - 1) // m) * m


def _vmem_budget_bytes():
    """Generation-aware VMEM budget: 3/8 of physical per-core VMEM.
    128 MiB (v5e/v6e) -> 48 MiB;  64 MiB (v7x) -> 24 MiB."""
    cap = 64 * 1024 * 1024
    try:
        info = pltpu.get_tpu_info()
        cap = int(getattr(info, "vmem_capacity_bytes", cap)) or cap
    except Exception:
        pass
    return (cap * 3) // 8


_VMEM_BUDGET = _vmem_budget_bytes()


def _pick_block_b(batch, n, f, vmem_budget_bytes):
    """Largest batch tile whose (8,128)-padded, double-buffered tiles fit the budget."""
    nf = n * f
    lane_in = _round_up(n, 128)        # h rows pad to 128 lanes when N < 128
    lane_out = _round_up(nf, 128)      # flat output rows pad to 128 lanes
    # Block-invariant operands (S and tiled bias): padded tiles, x2 buffers (conservative).
    fixed = 2 * 4 * (_round_up(n, 8) * lane_out + 8 * lane_out)
    # Batch-tiled, pipelined operands (h in, flat out): x2 double buffers each.
    per_row = 2 * 4 * (lane_in + lane_out)
    avail = max(vmem_budget_bytes - fixed, per_row)
    fit = max(int(avail // per_row), 1)

    if fit >= batch:
        if batch >= 16:
            # Guarantee >=2 grid blocks so v7x's two TensorCores split the batch.
            return _round_up(pl.cdiv(batch, 2), 8)
        return batch                   # whole (small) batch in one block
    tb = max((fit // 8) * 8, 8)        # sublane rule: multiple of 8
    return tb if tb < batch else batch


def _equivariant_kernel(h_ref, s_ref, b_ref, o_ref):
    """One batch tile: h (TB, N) @ S (N, N*F) on the MXU -> lane-dense (TB, N*F)."""
    pre = jnp.dot(
        h_ref[...], s_ref[...],
        preferred_element_type=jnp.float32,
        precision=lax.Precision.HIGHEST,
    )
    # EUP tanh + unmasked lane-dense store of the flattened output block.
    o_ref[...] = jnp.tanh(pre + b_ref[...])


@jax.jit
def input_equivariant_layer(h, weight, bias):
    """h: (B, N) f32; weight: (F, 2) as in nn.Linear; bias: (F,). Returns (B, N, F)."""
    B, N = h.shape
    F = weight.shape[0]
    h = h.astype(jnp.float32)

    # Block-invariant expansion matrix: S[m, n*F + f] = W[f,0]*(m==n) + W[f,1]/N
    # (the mean's 1/N is folded in here, built once in the wrapper, not per block).
    w0 = weight[:, 0].astype(jnp.float32)                 # multiplies h[b, n]
    w1_over_n = (weight[:, 1] / N).astype(jnp.float32)    # multiplies sum_m h[b, m]
    eye = jnp.eye(N, dtype=jnp.float32)
    s = (eye[:, :, None] * w0[None, None, :] + w1_over_n[None, None, :]).reshape(N, N * F)
    bias_flat = jnp.tile(bias.astype(jnp.float32), (N,)).reshape(1, N * F)

    block_b = _pick_block_b(B, N, F, _VMEM_BUDGET)
    grid = (pl.cdiv(B, block_b),)                         # ragged last tile is fine

    out_flat = pl.pallas_call(
        _equivariant_kernel,
        out_shape=jax.ShapeDtypeStruct((B, N * F), jnp.float32),
        grid=grid,
        in_specs=[
            pl.BlockSpec((block_b, N), lambda i: (i, 0)),   # full N per block (exact mean)
            pl.BlockSpec((N, N * F), lambda i: (0, 0)),     # block-invariant expansion S
            pl.BlockSpec((1, N * F), lambda i: (0, 0)),     # block-invariant tiled bias
        ],
        out_specs=pl.BlockSpec((block_b, N * F), lambda i: (i, 0)),
        compiler_params=pltpu.CompilerParams(
            dimension_semantics=("parallel",),              # v7x: 2 TCs split the batch
            vmem_limit_bytes=_VMEM_BUDGET,
        ),
    )(h, s, bias_flat)

    # Layout plumbing only: contiguous flat view back to the module's (B, N, F).
    return out_flat.reshape(B, N, F)


if __name__ == "__main__":
    # small, deterministic setup
    B = 2              # batch
    N = 8              # num_particles
    IN = 2             # in_features (forced to 2 by the stack in forward)
    F = 32             # out_features

    key = jax.random.PRNGKey(0)
    k_h, k_w, k_b = jax.random.split(key, 3)

    h = jax.random.normal(k_h, (B, N), dtype=jnp.float32)
    # deterministic "Linear" parameters (synthetic init, not a checkpoint)
    weight = jax.random.normal(k_w, (F, IN), dtype=jnp.float32) * 0.5
    bias = jax.random.normal(k_b, (F,), dtype=jnp.float32) * 0.1

    out = jax.block_until_ready(input_equivariant_layer(h, weight, bias))

    # Pure-JAX elementwise reference of the PyTorch forward (no matmul on the
    # reference side, so no TPU default-matmul-precision ambiguity).
    g_ref = jnp.mean(h, axis=1, keepdims=True)                       # (B, 1)
    ref = jnp.tanh(
        h[:, :, None] * weight[None, None, :, 0]
        + g_ref[:, :, None] * weight[None, None, :, 1]
        + bias[None, None, :]
    )
    assert out.shape == (B, N, F)
    err = float(jnp.max(jnp.abs(out - ref)))
    assert jnp.allclose(out, ref, atol=1e-4, rtol=1e-4), err

    print("KERNEL_OK")
</pallas_src>

<mosaic_0001>
module attributes {stable_mosaic.version = 11 : i64} {
  func.func @_equivariant_kernel(%arg0: i32, %arg1: memref<2x8xf32, #tpu.memory_space<vmem>>, %arg2: memref<8x256xf32, #tpu.memory_space<vmem>>, %arg3: memref<1x256xf32, #tpu.memory_space<vmem>>, %arg4: memref<2x256xf32, #tpu.memory_space<vmem>>) attributes {dimension_semantics = [#tpu.dimension_semantics<parallel>], iteration_bounds = array<i64: 1>, scalar_prefetch = 0 : i64, scratch_operands = 0 : i64, tpu.core_type = #tpu.core_type<tc>, window_params = [{transform_indices = @transform_0, window_bounds = array<i64: 2, 8>}, {pipeline_mode = #tpu.pipeline_mode<synchronous>, transform_indices = @transform_1, window_bounds = array<i64: 8, 256>}, {pipeline_mode = #tpu.pipeline_mode<synchronous>, transform_indices = @transform_2, window_bounds = array<i64: 1, 256>}, {transform_indices = @transform_3, window_bounds = array<i64: 2, 256>}]} {
    %c0 = arith.constant 0 : index
    %c0_0 = arith.constant 0 : index
    %0 = vector.load %arg1[%c0, %c0_0] : memref<2x8xf32, #tpu.memory_space<vmem>>, vector<2x8xf32>
    %c0_1 = arith.constant 0 : index
    %c0_2 = arith.constant 0 : index
    %1 = vector.load %arg2[%c0_1, %c0_2] : memref<8x256xf32, #tpu.memory_space<vmem>>, vector<8x256xf32>
    %cst = arith.constant dense<0.000000e+00> : vector<2x256xf32>
    %2 = tpu.matmul %0, %1, %cst {dimension_numbers = #tpu.dot_dimension_numbers<[1], [0], [0], [1], [0, 0, 1, 1], [], []>, precision = #tpu.contract_precision<fp32>} : vector<2x8xf32>, vector<8x256xf32>, vector<2x256xf32> -> vector<2x256xf32>
    %c0_3 = arith.constant 0 : index
    %c0_4 = arith.constant 0 : index
    %3 = vector.load %arg3[%c0_3, %c0_4] : memref<1x256xf32, #tpu.memory_space<vmem>>, vector<1x256xf32>
    %4 = vector.broadcast %3 : vector<1x256xf32> to vector<2x256xf32>
    %5 = arith.addf %2, %4 : vector<2x256xf32>
    %6 = math.tanh %5 : vector<2x256xf32>
    %c0_5 = arith.constant 0 : index
    %c0_6 = arith.constant 0 : index
    %7 = vector.load %arg4[%c0_5, %c0_6] : memref<2x256xf32, #tpu.memory_space<vmem>>, vector<2x256xf32>
    tpu.vector_store %arg4[%c0_5, %c0_6], %6 {strides = array<i32>} : memref<2x256xf32, #tpu.memory_space<vmem>>, vector<2x256xf32>,
    return
  }
  func.func @transform_0(%arg0: i32) -> (i32, i32) {
    %c0_i32 = arith.constant 0 : i32
    %c0_i32_0 = arith.constant 0 : i32
    return %arg0, %c0_i32 : i32, i32
  }
  func.func @transform_1(%arg0: i32) -> (i32, i32) {
    %c0_i32 = arith.constant 0 : i32
    %c0_i32_0 = arith.constant 0 : i32
    %c0_i32_1 = arith.constant 0 : i32
    return %c0_i32, %c0_i32_0 : i32, i32
  }
  func.func @transform_2(%arg0: i32) -> (i32, i32) {
    %c0_i32 = arith.constant 0 : i32
    %c0_i32_0 = arith.constant 0 : i32
    %c0_i32_1 = arith.constant 0 : i32
    return %c0_i32, %c0_i32_0 : i32, i32
  }
  func.func @transform_3(%arg0: i32) -> (i32, i32) {
    %c0_i32 = arith.constant 0 : i32
    %c0_i32_0 = arith.constant 0 : i32
    return %arg0, %c0_i32 : i32, i32
  }
}

</mosaic_0001>

<bundles_post_ra>
// kernel: tile.9
= control target key start
LH: loop header
LB: loop body
LE: loop exit
PB: predicated region body
PF: predicated region fallthrough
CT: control target
= control target key end

     0   :  { %s7_s6 = smov 3  ;;  %s46_s9 = smov 96   ;;  %vm4_vm0 = vcmask 261120   ;;  %vm11_vm1 = vcmask 1048320   ;;  %vm18_vm2 = vcmask 785920   ;;  %vm25_vm3 = vcmask 523520   ;;  %s77_s0 = inlined_call_operand.vmem [shape: f32[8,32], index: 0, kind: input, shape index: {}]   ;;  %s78_s1 = inlined_call_operand.vmem [shape: f32[1,256], index: 1, kind: output, shape index: {}]  }
   0x1   :  { %v39_v0 = vld [vmem:[%s77_s0 + $0x3] ss:$4 sm:%s7_s6]   ;;  %s21_s10 = smov 3  ;;  %s14_s13 = smov 3 }
   0x2   :  { %9 = vrot.lane.b32.xlu0 %v39_v0, %s46_s9  ;;  %v41_v1 = vld [vmem:[%s77_s0 + $0x1] ss:$4 sm:%s21_s10]   ;;  %s47_s14 = smov 32   ;;  %s48_s17 = smov 64  }
   0x3   :  { %23 = vrot.lane.b32.xlu1 %v41_v1, %s47_s14  ;;  %v40_v2 = vld [vmem:[%s77_s0 + $0x2] ss:$4 sm:%s14_s13]   ;;  %s2_s18 = smov 3 }
   0x4   :  { %v3_v3 = vld [vmem:[%s77_s0] ss:$4 sm:%s2_s18]  }
   0x5   :  { %5 = vst.msk [vmem:[#allocation0] ss:$8 sm:$0x3] %vm4_vm0, %v3_v3  }
   0xa   :  { %16 = vrot.lane.b32.xlu0 %v40_v2, %s48_s17 }
  0x74   :  { %v10_v4 = vpop.permute.xlu0 %9  }
  0x75   :  { %12 = vst.msk [vmem:[#allocation0] ss:$8 sm:$0x3] %vm11_vm1, %v10_v4   ;;  %v24_v5 = vpop.permute.xlu1 %23  }
  0x7c   :  { %v17_v6 = vpop.permute.xlu0 %16  }
  0x7d   :  { %19 = vst.msk [vmem:[#allocation0] ss:$8 sm:$0x3] %vm18_vm2, %v17_v6  }
  0x7e   :  { %26 = vst.msk [vmem:[#allocation0] ss:$8 sm:$0x3] %vm25_vm3, %v24_v5  }
  0x85   :  { %v29_v7 = vld [vmem:[#allocation0] sm:$0x1]  ;;  %v34_v8 = vld [vmem:[#allocation0 + $0x8] sm:$0x1] }
  0x86   :  { %32 = vst [vmem:[%s78_s1] sm:$0x1] %v29_v7 }
  0x87   :  { %42 = vst [vmem:[%s78_s1 + $0x1] sm:$0x1] %v34_v8 }

// kernel: input_equivariant_layer.1
= control target key start
LH: loop header
LB: loop body
LE: loop exit
PB: predicated region body
PF: predicated region fallthrough
CT: control target
= control target key end

     0   :  { %vm23_vm0 = vcmask 64512   ;;  %vm324_vm1 = vcmask 1041408   ;;  %s371_s1 = inlined_call_operand.vmem [shape: f32[8,256], index: 1, kind: input, shape index: {}]   ;;  %s372_s0 = inlined_call_operand.vmem [shape: f32[2,8], index: 0, kind: input, shape index: {}]   ;;  %s373_s2 = inlined_call_operand.vmem [shape: f32[1,256], index: 2, kind: input, shape index: {}]   ;;  %s374_s3 = inlined_call_operand.vmem [shape: f32[2,256], index: 3, kind: output, shape index: {}]  }
   0x1   :  { %v15_v0 = vld [vmem:[%s371_s1] sm:$0xff]  ;;  %v16_v1 = vld [vmem:[%s371_s1 + $0x8] sm:$0xff] }
   0x2   :  { %v14_v2 = vld [vmem:[%s372_s0] sm:$0x3]  ;;  %v42_v3 = vand.u32 4294901760, %v15_v0  ;;  %v188_v5 = vand.u32 4294901760, %v16_v1 }
   0x3   :  { %v25_v4 = vsel %vm23_vm0, %v14_v2, 0  ;;  %v17_v19 = vld [vmem:[%s373_s2] sm:$0x3] }
   0x4   :  { %v44_v6 = vand.u32 4294901760, %v25_v4  ;;  %v69_v7 = vsub.f32 %v15_v0, %v42_v3  ;;  %43 = vmatpush.msra.mxu0 %v42_v3  ;;  %119 = vmatpush.msra.mxu3 %v42_v3  ;;  %v215_v8 = vsub.f32 %v16_v1, %v188_v5  ;;  %v19_v20 = vperm.slane %v17_v19, 0 }
   0x5   :  { %v20_v26 = vperm.slane %v17_v19, 1 }
   0x6   :  { %v45_v9 = vsub.f32 %v25_v4, %v44_v6  ;;  %96 = vmatpush.msra.mxu2 %v69_v7  ;;  %v70_v10 = vand.u32 4294901760, %v69_v7  ;;  %v216_v11 = vand.u32 4294901760, %v215_v8 }
   0x8   :  { %99 = vmatmul.f32.vlgmr.msra.gmra.mxu2 %v45_v9  ;;  %v46_v12 = vand.u32 4294901760, %v45_v9  ;;  %145 = vmatpush.msrb.mxu0 %v70_v10  ;;  %v217_v13 = vsub.f32 %v215_v8, %v216_v11  ;;  %v71_v14 = vsub.f32 %v69_v7, %v70_v10 }
   0x9   :  { %189 = vmatpush.msrb.mxu2 %v188_v5 }
   0xa   :  { %v47_v15 = vsub.f32 %v45_v9, %v46_v12  ;;  %123 = vmatmul.f32.vlgmr.msra.gmra.mxu3 %v46_v12  ;;  %v218_v16 = vand.u32 4294901760, %v217_v13  ;;  %v72_v17 = vand.u32 4294901760, %v71_v14 }
   0xb   :  { %291 = vmatpush.msra.mxu2 %v216_v11 }
   0xc   :  { %v48_v18 = vand.u32 4294901760, %v47_v15  ;;  %219 = vmatpush.msrb.mxu3 %v218_v16  ;;  %73 = vmatpush.msra.mxu1 %v72_v17 }
   0xd   :  { %75 = vmatmul.f32.vlgmr.msra.gmra.mxu1 %v44_v6 }
   0xe   :  { %49 = vmatmul.f32.vlgmr.msra.gmra.mxu0 %v48_v18  ;;  %167 = vmatpush.msrb.mxu1 %v42_v3 }
   0xf   :  { %242 = vmatpush.msra.mxu0 %v215_v8  ;;  %313 = vmatpush.msra.mxu3 %v188_v5 }
  0x10   :  { %195 = vmatmul.f32.vlgmr.msrb.gmra.mxu2 %v48_v18  ;;  %265 = vmatpush.msra.mxu1 %v188_v5 }
  0x12   :  { %221 = vmatmul.f32.vlgmr.msrb.gmra.mxu3 %v44_v6 }
  0x15   :  { %169 = vmatmul.f32.vlgmr.msrb.gmra.mxu1 %v44_v6 }
  0x16   :  { %147 = vmatmul.f32.vlgmr.msrb.gmra.mxu0 %v44_v6 }
  0x18   :  { %293 = vmatmul.f32.vlgmr.msra.gmra.mxu2 %v44_v6 }
  0x1a   :  { %315 = vmatmul.f32.vlgmr.msra.gmra.mxu3 %v44_v6 }
  0x1d   :  { %269 = vmatmul.f32.vlgmr.msra.gmra.mxu1 %v46_v12 }
  0x1e   :  { %245 = vmatmul.f32.vlgmr.msra.gmra.mxu0 %v45_v9 }
  0x8a   :  { %v76_v22 = vpop.f32.mrf.mxu1 }
  0x8b   :  { %v50_v21 = vpop.f32.mrf.mxu0  ;;  %v100_v23 = vpop.f32.mrf.mxu2 }
  0x8c   :  { %v51_v25 = vadd.f32 %v50_v21, %v19_v20 }
  0x8d   :  { %v124_v24 = vpop.f32.mrf.mxu3 }
  0x8e   :  { %v77_v27 = vadd.f32 %v76_v22, %v51_v25 }
  0x90   :  { %v101_v33 = vadd.f32 %v100_v23, %v77_v27 }
  0x92   :  { %v170_v29 = vpop.f32.mrf.mxu1  ;;  %v125_v35 = vadd.f32 %v124_v24, %v101_v33 }
  0x93   :  { %v148_v28 = vpop.f32.mrf.mxu0  ;;  %v196_v30 = vpop.f32.mrf.mxu2 }
  0x94   :  { %v197_v31 = vadd.f32 %v196_v30, %v20_v26  ;;  %v149_v40 = vadd.f32 %v148_v28, %v125_v35 }
  0x95   :  { %v222_v32 = vpop.f32.mrf.mxu3 }
  0x96   :  { %v223_v34 = vadd.f32 %v222_v32, %v197_v31  ;;  %v171_v44 = vadd.f32 %v170_v29, %v149_v40 }
  0x9a   :  { %v270_v37 = vpop.f32.mrf.mxu1 }
  0x9b   :  { %v246_v36 = vpop.f32.mrf.mxu0  ;;  %v294_v39 = vpop.f32.mrf.mxu2 }
  0x9c   :  { %v247_v38 = vadd.f32 %v246_v36, %v223_v34 }
  0x9d   :  { %v316_v42 = vpop.f32.mrf.mxu3 }
  0x9e   :  { %v271_v41 = vadd.f32 %v270_v37, %v247_v38 }
  0xa0   :  { %v295_v43 = vadd.f32 %v294_v39, %v271_v41 }
  0xa2   :  { %v317_v45 = vadd.f32 %v316_v42, %v295_v43 }
  0xa4   :  { %332 = vtanh.f32 %v317_v45 }
  0xa5   :  { %334 = vtanh.f32 %v171_v44 }
  0xaa   :  { %v333_v46 = vpop.eup %332 }
  0xab   :  { %v323_v47 = vrot.slane %v333_v46, 6  ;;  %v335_v48 = vpop.eup %334 }
  0xad   :  { %v325_v49 = vsel %vm324_vm1, %v335_v48, %v323_v47 }
  0xae   :  { %327 = vst [vmem:[%s374_s3] sm:$0xf] %v325_v49 }

</bundles_post_ra>
